<compile_context>
chip_gen: v7x
topology: tpu7x:2x2x1
jax: 0.10.0
libtpu: 0.0.40
codegen_flags: <defaults>
</compile_context>

<pallas_src>
import functools

import jax
import jax.numpy as jnp
from jax.experimental import pallas as pl
from jax.experimental.pallas import tpu as pltpu

IN_DIM = 28 * 28          # 784 (divisible by 8 -> legal full-extent sublane dim)
OUT_DIM = 10
N_PAD = 128               # padded output dim -> lane-dense (unmasked) stores


def _round_up(x: int, m: int) -> int:
    return (x + m - 1) // m * m


def mlp_kernel(x_ref, w1_ref, b1_ref, w2_ref, b2_ref, o_ref):
    # Cast activations to bf16 in-kernel (VPU has slack); W1 is already bf16.
    x = x_ref[...].astype(jnp.bfloat16)
    # Layer 1: bf16 x bf16 MXU matmul with exact f32 accumulation.
    h = jnp.dot(x, w1_ref[...], preferred_element_type=jnp.float32)
    h = jnp.maximum(h + b1_ref[...], 0.0)
    # Layer 2: tiny (H x 128) matmul against the resident f32 W2 (bit-identical
    # to the f32 reference math; no per-iteration weight upcast).
    y = jnp.dot(h, w2_ref[...], preferred_element_type=jnp.float32)
    o_ref[...] = jnp.maximum(y + b2_ref[...], 0.0)


def prepare_params(w1, b1, w2, b2, hidden_dim=128):
    """Pad + cast weights once (hidden -> mult. of 128, out 10 -> 128).

    w1: (784, hidden), b1: (hidden,), w2: (hidden, 10), b2: (10,)
    W1 is stored bf16 (halves the dominant weight DMA); W2/biases stay f32.
    """
    H = _round_up(hidden_dim, 128)
    w1_p = jnp.zeros((IN_DIM, H), jnp.bfloat16).at[:, :hidden_dim].set(
        w1.astype(jnp.bfloat16))
    b1_p = jnp.zeros((1, H), jnp.float32).at[:, :hidden_dim].set(
        b1.reshape(1, -1).astype(jnp.float32))
    w2_p = jnp.zeros((H, N_PAD), jnp.float32).at[:hidden_dim, :OUT_DIM].set(
        w2.astype(jnp.float32))
    b2_p = jnp.zeros((1, N_PAD), jnp.float32).at[:, :OUT_DIM].set(
        b2.reshape(1, -1).astype(jnp.float32))
    return w1_p, b1_p, w2_p, b2_p


def _batch_tile(B: int, block_b: int) -> int:
    """Large tile to amortize per-step overhead, but aim for >=2 grid steps so
    v7x's two TensorCores both get work (no effect on single-TC v5e/v6e)."""
    if B > block_b:
        return block_b
    half = _round_up(pl.cdiv(B, 2), 8)
    return half if half < B else B      # tiny batches: single full-extent tile


@functools.partial(jax.jit, static_argnames=("block_b",))
def classifier_forward(x_nchw, params, *, block_b: int = 1024):
    """x_nchw: (B, 1, 28, 28) float32. params: output of prepare_params.
    Returns (B, 10) float32 logits (with the module's trailing ReLU applied)."""
    w1_p, b1_p, w2_p, b2_p = params
    B = x_nchw.shape[0]
    H = w1_p.shape[1]

    # Flatten like torch .view — free; no pad, no dtype cast in the wrapper.
    x = x_nchw.reshape(B, IN_DIM)

    TB = _batch_tile(B, block_b)
    grid = (pl.cdiv(B, TB),)

    out = pl.pallas_call(
        mlp_kernel,
        out_shape=jax.ShapeDtypeStruct((B, N_PAD), jnp.float32),
        grid=grid,
        in_specs=[
            pl.BlockSpec((TB, IN_DIM), lambda i: (i, 0)),   # x: tiled over batch
            pl.BlockSpec((IN_DIM, H), lambda i: (0, 0)),    # W1 bf16: VMEM-resident
            pl.BlockSpec((1, H), lambda i: (0, 0)),         # b1: resident
            pl.BlockSpec((H, N_PAD), lambda i: (0, 0)),     # W2 f32: resident
            pl.BlockSpec((1, N_PAD), lambda i: (0, 0)),     # b2: resident
        ],
        out_specs=pl.BlockSpec((TB, N_PAD), lambda i: (i, 0)),  # lane-dense
        compiler_params=pltpu.CompilerParams(
            dimension_semantics=("parallel",)),
    )(x, w1_p, b1_p, w2_p, b2_p)

    # Partial last batch block is masked on store; just slice the padded lanes.
    return out[:, :OUT_DIM]


def init_params(key, hidden_dim=128, in_dim=IN_DIM, out_dim=OUT_DIM):
    """Deterministic synthetic params matching torch.nn.Linear shapes
    (stored transposed as (in, out) for the kernel)."""
    k1, k2, k3, k4 = jax.random.split(key, 4)
    bound1 = 1.0 / jnp.sqrt(in_dim)
    bound2 = 1.0 / jnp.sqrt(hidden_dim)
    w1 = jax.random.uniform(k1, (in_dim, hidden_dim), jnp.float32, -bound1, bound1)
    b1 = jax.random.uniform(k2, (hidden_dim,), jnp.float32, -bound1, bound1)
    w2 = jax.random.uniform(k3, (hidden_dim, out_dim), jnp.float32, -bound2, bound2)
    b2 = jax.random.uniform(k4, (out_dim,), jnp.float32, -bound2, bound2)
    return w1, b1, w2, b2


if __name__ == "__main__":
    key = jax.random.PRNGKey(0)
    k_x, k_p = jax.random.split(key)

    B, hidden_dim = 2, 128
    x = jax.random.normal(k_x, (B, 1, 28, 28), jnp.float32)   # NCHW, like MNIST
    w1, b1, w2, b2 = init_params(k_p, hidden_dim=hidden_dim)

    params = prepare_params(w1, b1, w2, b2, hidden_dim=hidden_dim)
    out = jax.block_until_ready(classifier_forward(x, params))
    assert out.shape == (B, 10)

    # Reference with identical bf16 rounding of x / W1 (f32 accumulate, f32 W2)
    # -> tight tolerance.
    xf = x.reshape(B, -1)
    x_r = xf.astype(jnp.bfloat16).astype(jnp.float32)
    w1_r = w1.astype(jnp.bfloat16).astype(jnp.float32)
    h_r = jnp.maximum(x_r @ w1_r + b1, 0.0)
    ref = jnp.maximum(h_r @ w2 + b2, 0.0)
    assert jnp.allclose(out, ref, atol=1e-3, rtol=1e-3)

    # Loose sanity check against the pure-f32 PyTorch-equivalent math.
    ref_f32 = jnp.maximum(jnp.maximum(xf @ w1 + b1, 0.0) @ w2 + b2, 0.0)
    assert jnp.allclose(out, ref_f32, atol=5e-2, rtol=5e-2)

    print("KERNEL_OK")
</pallas_src>

<mosaic_0001>
module attributes {stable_mosaic.version = 11 : i64} {
  func.func @mlp_kernel(%arg0: i32, %arg1: memref<2x784xf32, #tpu.memory_space<vmem>>, %arg2: memref<784x128xbf16, #tpu.memory_space<vmem>>, %arg3: memref<1x128xf32, #tpu.memory_space<vmem>>, %arg4: memref<128x128xf32, #tpu.memory_space<vmem>>, %arg5: memref<1x128xf32, #tpu.memory_space<vmem>>, %arg6: memref<2x128xf32, #tpu.memory_space<vmem>>) attributes {dimension_semantics = [#tpu.dimension_semantics<parallel>], iteration_bounds = array<i64: 1>, scalar_prefetch = 0 : i64, scratch_operands = 0 : i64, tpu.core_type = #tpu.core_type<tc>, window_params = [{transform_indices = @transform_0, window_bounds = array<i64: 2, 784>}, {pipeline_mode = #tpu.pipeline_mode<synchronous>, transform_indices = @transform_1, window_bounds = array<i64: 784, 128>}, {pipeline_mode = #tpu.pipeline_mode<synchronous>, transform_indices = @transform_2, window_bounds = array<i64: 1, 128>}, {pipeline_mode = #tpu.pipeline_mode<synchronous>, transform_indices = @transform_3, window_bounds = array<i64: 128, 128>}, {pipeline_mode = #tpu.pipeline_mode<synchronous>, transform_indices = @transform_4, window_bounds = array<i64: 1, 128>}, {transform_indices = @transform_5, window_bounds = array<i64: 2, 128>}]} {
    %c0 = arith.constant 0 : index
    %c0_0 = arith.constant 0 : index
    %0 = vector.load %arg1[%c0, %c0_0] : memref<2x784xf32, #tpu.memory_space<vmem>>, vector<2x784xf32>
    %1 = arith.truncf %0 : vector<2x784xf32> to vector<2x784xbf16>
    %c0_1 = arith.constant 0 : index
    %c0_2 = arith.constant 0 : index
    %2 = vector.load %arg2[%c0_1, %c0_2] : memref<784x128xbf16, #tpu.memory_space<vmem>>, vector<784x128xbf16>
    %cst = arith.constant dense<0.000000e+00> : vector<2x128xf32>
    %3 = tpu.matmul %1, %2, %cst {dimension_numbers = #tpu.dot_dimension_numbers<[1], [0], [0], [1], [0, 0, 1, 1], [], []>} : vector<2x784xbf16>, vector<784x128xbf16>, vector<2x128xf32> -> vector<2x128xf32>
    %c0_3 = arith.constant 0 : index
    %c0_4 = arith.constant 0 : index
    %4 = vector.load %arg3[%c0_3, %c0_4] : memref<1x128xf32, #tpu.memory_space<vmem>>, vector<1x128xf32>
    %5 = vector.broadcast %4 : vector<1x128xf32> to vector<2x128xf32>
    %6 = arith.addf %3, %5 : vector<2x128xf32>
    %cst_5 = arith.constant 0.000000e+00 : f32
    %7 = vector.broadcast %cst_5 : f32 to vector<2x128xf32>
    %8 = arith.maximumf %6, %7 : vector<2x128xf32>
    %c0_6 = arith.constant 0 : index
    %c0_7 = arith.constant 0 : index
    %9 = vector.load %arg4[%c0_6, %c0_7] : memref<128x128xf32, #tpu.memory_space<vmem>>, vector<128x128xf32>
    %cst_8 = arith.constant dense<0.000000e+00> : vector<2x128xf32>
    %10 = tpu.matmul %8, %9, %cst_8 {dimension_numbers = #tpu.dot_dimension_numbers<[1], [0], [0], [1], [0, 0, 1, 1], [], []>} : vector<2x128xf32>, vector<128x128xf32>, vector<2x128xf32> -> vector<2x128xf32>
    %c0_9 = arith.constant 0 : index
    %c0_10 = arith.constant 0 : index
    %11 = vector.load %arg5[%c0_9, %c0_10] : memref<1x128xf32, #tpu.memory_space<vmem>>, vector<1x128xf32>
    %12 = vector.broadcast %11 : vector<1x128xf32> to vector<2x128xf32>
    %13 = arith.addf %10, %12 : vector<2x128xf32>
    %cst_11 = arith.constant 0.000000e+00 : f32
    %14 = vector.broadcast %cst_11 : f32 to vector<2x128xf32>
    %15 = arith.maximumf %13, %14 : vector<2x128xf32>
    %c0_12 = arith.constant 0 : index
    %c0_13 = arith.constant 0 : index
    %16 = vector.load %arg6[%c0_12, %c0_13] : memref<2x128xf32, #tpu.memory_space<vmem>>, vector<2x128xf32>
    tpu.vector_store %arg6[%c0_12, %c0_13], %15 {strides = array<i32>} : memref<2x128xf32, #tpu.memory_space<vmem>>, vector<2x128xf32>,
    return
  }
  func.func @transform_0(%arg0: i32) -> (i32, i32) {
    %c0_i32 = arith.constant 0 : i32
    %c0_i32_0 = arith.constant 0 : i32
    return %arg0, %c0_i32 : i32, i32
  }
  func.func @transform_1(%arg0: i32) -> (i32, i32) {
    %c0_i32 = arith.constant 0 : i32
    %c0_i32_0 = arith.constant 0 : i32
    %c0_i32_1 = arith.constant 0 : i32
    return %c0_i32, %c0_i32_0 : i32, i32
  }
  func.func @transform_2(%arg0: i32) -> (i32, i32) {
    %c0_i32 = arith.constant 0 : i32
    %c0_i32_0 = arith.constant 0 : i32
    %c0_i32_1 = arith.constant 0 : i32
    return %c0_i32, %c0_i32_0 : i32, i32
  }
  func.func @transform_3(%arg0: i32) -> (i32, i32) {
    %c0_i32 = arith.constant 0 : i32
    %c0_i32_0 = arith.constant 0 : i32
    %c0_i32_1 = arith.constant 0 : i32
    return %c0_i32, %c0_i32_0 : i32, i32
  }
  func.func @transform_4(%arg0: i32) -> (i32, i32) {
    %c0_i32 = arith.constant 0 : i32
    %c0_i32_0 = arith.constant 0 : i32
    %c0_i32_1 = arith.constant 0 : i32
    return %c0_i32, %c0_i32_0 : i32, i32
  }
  func.func @transform_5(%arg0: i32) -> (i32, i32) {
    %c0_i32 = arith.constant 0 : i32
    %c0_i32_0 = arith.constant 0 : i32
    return %arg0, %c0_i32 : i32, i32
  }
}

</mosaic_0001>

<bundles_post_ra>
// kernel: classifier_forward.1
= control target key start
LH: loop header
LB: loop body
LE: loop exit
PB: predicated region body
PF: predicated region fallthrough
CT: control target
= control target key end

     0   :  { %10 = vsyncpa [#allocation3], 0  ;;  %s1194_s0 = inlined_call_operand.vmem [shape: f32[2,784], index: 0, kind: input, shape index: {}]   ;;  %s1195_s1 = inlined_call_operand.hbm [shape: bf16[784,128], index: 1, kind: input, shape index: {}]   ;;  %s1196_s2 = inlined_call_operand.vmem [shape: f32[1,128], index: 2, kind: input, shape index: {}]   ;;  %s1197_s3 = inlined_call_operand.vmem [shape: f32[128,128], index: 3, kind: input, shape index: {}]   ;;  %s1198_s4 = inlined_call_operand.vmem [shape: f32[1,128], index: 4, kind: input, shape index: {}]   ;;  %s1199_s5 = inlined_call_operand.hbm [shape: f32[2,128], index: 5, kind: output, shape index: {}]  }
   0x1   :  { %11 = vsyncpa [#allocation4], 0  ;;  %s1070_s18 = smov [#allocation2]   ;;  %s1022_s22 = scalar_lea.hbm %s1195_s1, 6272 }
   0x2   :  { %s19_s19 = sshll.u32 %s1070_s18, 4  ;;  %p1023_p0 = scmp.ne.s32.totalorder %s1195_s1, %s1022_s22  ;;  %s20_s19 = int_to_ptr.vmem [resolvable:$true] %s19_s19 }
   0x3   :  { %p1026_p1 = scmp.lt.u32.totalorder %s1022_s22, %s1195_s1 }
   0x5   :  { %p1028_p2 = pnand %p1026_p1, %p1023_p0 }
   0x7   :  { %1031 = shalt.err (!%p1028_p2)
}
   0x8   :  { %s1032_s27 = scalar_lea.vmem %s20_s19, 6272  ;;  %p1037_p4 = scmp.lt.s32.totalorder %s20_s19, %s20_s19 }
   0x9   :  { %p1033_p3 = scmp.ne.s32.totalorder %s20_s19, %s1032_s27  ;;  %p1038_p5 = scmp.lt.s32.totalorder %s1032_s27, %s1032_s27 }
   0xb   :  { %p1039_p6 = por %p1038_p5, %p1037_p4 }
   0xd   :  { %p1040_p7 = pnand %p1039_p6, %p1033_p3 }
   0xf   :  { %1043 = shalt.err (!%p1040_p7)
}
  0x10   :  { %s1071_s28 = smov 64   ;;  %s1072_s29 = smov 4  }
  0x11   :  { %25 = dma.hbm_to_vmem [thread:$0]  %s1195_s1, 6272, %s20_s19, [#allocation3], %s1071_s28, %s1071_s28, %s1072_s29  }
  0x12   :  { %1066 = dma.done.wait [#allocation3], 6272  }
  0x13   :  { %1067 = vsyncadd [#allocation3], 4294961024  ;;  %v971_v0 = vld [vmem:[#allocation2 + $0x40] sm:$0xff]   ;;  %v975_v4 = vld [vmem:[#allocation2 + $0x48] sm:$0xff]   ;;  %v1073_v21 = vmov 1983009808   ;;  %v44_v23 = vlaneseq }
  0x14   :  { %v972_v1 = vld [vmem:[#allocation2] sm:$0xff]   ;;  %813 = vmatprep.subr.bf16.mxu0 %v971_v0  ;;  %v976_v5 = vld [vmem:[#allocation2 + $0x8] sm:$0xff]   ;;  %v979_v8 = vld [vmem:[#allocation2 + $0x50] sm:$0xff]   ;;  %v42_v22 = vunpack.c.l.s4 %v1073_v21  ;;  %v1074_v45 = vmov 0.0   ;;  %vm1075_vm0 = vmmov 0   ;;  %vm486_vm1 = vcmask 130048  }
  0x15   :  { %v973_v2 = vld [vmem:[#allocation2 + $0xc0] sm:$0xff]   ;;  %814 = vmatpush3.bf16.msra.mxu0 %v972_v1  ;;  %v977_v6 = vld [vmem:[#allocation2 + $0xc8] sm:$0xff]   ;;  %v980_v9 = vld [vmem:[#allocation2 + $0x10] sm:$0xff]   ;;  %v45_v29 = vshrl.u32 %v44_v23, 7  ;;  %s1077_s16 = smov [#allocation5]  }
  0x16   :  { %v974_v3 = vld [vmem:[#allocation2 + $0x80] sm:$0xff]   ;;  %835 = vmatprep.subr.bf16.mxu1 %v973_v2  ;;  %815 = vmatprep.subr.bf16.mxu0 %v975_v4  ;;  %v978_v7 = vld [vmem:[#allocation2 + $0x88] sm:$0xff]   ;;  %v981_v10 = vld [vmem:[#allocation2 + $0xd0] sm:$0xff]   ;;  %v43_v28 = vunpack.c.0.s8 %v42_v22  ;;  %s752_s17 = sshll.u32 %s1077_s16, 4  ;;  %s753_s17 = int_to_ptr.vmem [resolvable:$true] %s752_s17 }
  0x17   :  { %836 = vmatpush3.bf16.msra.mxu1 %v974_v3  ;;  %v982_v11 = vld [vmem:[#allocation2 + $0x90] sm:$0xff]   ;;  %v983_v12 = vld [vmem:[#allocation2 + $0x58] sm:$0xff]   ;;  %v987_v16 = vld [vmem:[#allocation2 + $0x60] sm:$0xff]   ;;  %s1044_s18 = scalar_lea.vmem %s753_s17, 32  ;;  %p1049_p9 = scmp.lt.s32.totalorder %s753_s17, %s753_s17 }
  0x18   :  { %837 = vmatprep.subr.bf16.mxu1 %v977_v6  ;;  %v984_v13 = vld [vmem:[#allocation2 + $0x18] sm:$0xff]   ;;  %v988_v17 = vld [vmem:[#allocation2 + $0x20] sm:$0xff]   ;;  %v991_v20 = vld [vmem:[#allocation2 + $0x68] sm:$0xff]   ;;  %v46_v34 = vsub.s32 %v43_v28, %v45_v29  ;;  %p1045_p8 = scmp.ne.s32.totalorder %s753_s17, %s1044_s18  ;;  %p1050_p10 = scmp.lt.s32.totalorder %s1044_s18, %s1044_s18 }
  0x19   :  { %816 = vmatpush3.bf16.msra.mxu0 %v976_v5  ;;  %v985_v14 = vld [vmem:[#allocation2 + $0xd8] sm:$0xff]   ;;  %v989_v18 = vld [vmem:[#allocation2 + $0xe0] sm:$0xff]   ;;  %v992_v24 = vld [vmem:[#allocation2 + $0x28] sm:$0xff]  }
  0x1a   :  { %817 = vmatprep.subr.bf16.mxu0 %v979_v8  ;;  %v986_v15 = vld [vmem:[#allocation2 + $0x98] sm:$0xff]   ;;  %v990_v19 = vld [vmem:[#allocation2 + $0xa0] sm:$0xff]   ;;  %v993_v25 = vld [vmem:[#allocation2 + $0xe8] sm:$0xff]   ;;  %p1051_p11 = por %p1050_p10, %p1049_p9 }
  0x1b   :  { %838 = vmatpush3.bf16.msra.mxu1 %v978_v7  ;;  %v994_v26 = vld [vmem:[#allocation2 + $0xa8] sm:$0xff]   ;;  %v995_v27 = vld [vmem:[#allocation2 + $0x70] sm:$0xff]   ;;  %v999_v33 = vld [vmem:[#allocation2 + $0x78] sm:$0xff]  }
  0x1c   :  { %839 = vmatprep.subr.bf16.mxu1 %v981_v10  ;;  %v996_v30 = vld [vmem:[#allocation2 + $0x30] sm:$0xff]   ;;  %v1000_v35 = vld [vmem:[#allocation2 + $0x38] sm:$0xff]   ;;  %v36_v37 = vld [vmem:[%s1194_s0] sm:$0xff]  ;;  %p1052_p12 = pnand %p1051_p11, %p1045_p8 }
  0x1d   :  { %818 = vmatpush3.bf16.msra.mxu0 %v980_v9  ;;  %v997_v31 = vld [vmem:[#allocation2 + $0xf0] sm:$0xff]   ;;  %v1001_v36 = vld [vmem:[#allocation2 + $0xf8] sm:$0xff]   ;;  %v47_v38 = vrot.slane %v36_v37, %v46_v34  ;;  %v40_v40 = vcombine.high %v36_v37, %v36_v37  ;;  %v1003_v41 = vld [vmem:[#allocation2 + $0x140] sm:$0xff]  }
  0x1e   :  { %819 = vmatprep.subr.bf16.mxu0 %v983_v12  ;;  %v998_v32 = vld [vmem:[#allocation2 + $0xb0] sm:$0xff]   ;;  %v1002_v39 = vld [vmem:[#allocation2 + $0xb8] sm:$0xff]   ;;  %v1005_v48 = vld [vmem:[#allocation2 + $0x100] sm:$0xff]  }
  0x1f   :  { %840 = vmatpush3.bf16.msra.mxu1 %v982_v11  ;;  %v55_v42 = vcombine.high %v47_v38, %v47_v38  ;;  %v54_v43 = vrot.slane %v40_v40, %v46_v34  ;;  %v80_v44 = vpack.c.bf16 %v47_v38, %v47_v38  ;;  %v1006_v50 = vld [vmem:[#allocation2 + $0x148] sm:$0xff]   ;;  %v1008_v53 = vld [vmem:[#allocation2 + $0x150] sm:$0xff]   ;;  %v1010_v55 = vld [vmem:[#allocation2 + $0x158] sm:$0xff]  }
  0x20   :  { %841 = vmatprep.subr.bf16.mxu1 %v985_v14  ;;  %v1007_v52 = vld [vmem:[#allocation2 + $0x108] sm:$0xff]   ;;  %v1009_v54 = vld [vmem:[#allocation2 + $0x110] sm:$0xff]   ;;  %v1011_v56 = vld [vmem:[#allocation2 + $0x118] sm:$0xff]  }
  0x21   :  { %820 = vmatpush3.bf16.msra.mxu0 %v984_v13  ;;  %v81_v46 = vpack.c.bf16 %v55_v42, %v55_v42  ;;  %v56_v47 = vcombine.high %v54_v43, %v54_v43  ;;  %v82_v49 = vpack.c.bf16 %v54_v43, %v54_v43  ;;  %v1012_v57 = vld [vmem:[#allocation2 + $0x160] sm:$0xff]   ;;  %v37_v59 = vld [vmem:[%s1194_s0 + $0x8] sm:$0x3f]  ;;  %v1016_v5 = vld [vmem:[#allocation2 + $0x170] sm:$0xff]   ;;  %v1076_v13 = vmov 0.0|0.0  }
  0x22   :  { %821 = vmatprep.subr.bf16.mxu0 %v987_v16  ;;  %v1020_v58 = vld [vmem:[#allocation2 + $0x180] sm:$0xff]   ;;  %v57_v60 = vcombine.high %v37_v59, %v37_v59  ;;  %v64_v61 = vrot.slane %v37_v59, %v46_v34  ;;  %v1014_v1 = vld [vmem:[#allocation2 + $0x168] sm:$0xff]   ;;  %v1017_v6 = vld [vmem:[#allocation2 + $0x130] sm:$0xff]  }
  0x23   :  { %842 = vmatpush3.bf16.msra.mxu1 %v986_v15  ;;  %522 = vmatprep.mubr.bf16.mxu0 %v81_v46  ;;  %v83_v51 = vpack.c.bf16 %v56_v47, %v56_v47  ;;  %v1013_v62 = vld [vmem:[#allocation2 + $0x120] sm:$0xff]   ;;  %v1015_v4 = vld [vmem:[#allocation2 + $0x128] sm:$0xff]   ;;  %v1018_v7 = vld [vmem:[#allocation2 + $0x178] sm:$0xff]  }
  0x24   :  { %843 = vmatprep.subr.bf16.mxu1 %v989_v18  ;;  %v71_v63 = vrot.slane %v57_v60, %v46_v34  ;;  %v72_v0 = vcombine.high %v64_v61, %v64_v61  ;;  %v1019_v8 = vld [vmem:[#allocation2 + $0x138] sm:$0xff]   ;;  %v84_v9 = vpack.c.bf16 %v64_v61, %v64_v61  ;;  %v651_v10 = vld [vmem:[%s1197_s3] sm:$0xff]  ;;  %v652_v11 = vld [vmem:[%s1197_s3 + $0x8] sm:$0xff] }
  0x25   :  { %822 = vmatpush3.bf16.msra.mxu0 %v988_v17  ;;  %562 = vmatprep.mubr.bf16.mxu1 %v83_v51  ;;  %v653_v12 = vld [vmem:[%s1197_s3 + $0x10] sm:$0xff]  ;;  %v940_v14 = vpack.c.bf16 %v652_v11, %v651_v10  ;;  %v654_v15 = vld [vmem:[%s1197_s3 + $0x18] sm:$0xff]  ;;  %v655_v17 = vld [vmem:[%s1197_s3 + $0x20] sm:$0xff] }
  0x26   :  { %823 = vmatprep.subr.bf16.mxu0 %v991_v20  ;;  %v85_v2 = vpack.c.bf16 %v72_v0, %v72_v0  ;;  %v86_v3 = vpack.c.bf16 %v71_v63, %v71_v63  ;;  %v943_v16 = vpack.c.bf16 %v654_v15, %v653_v12  ;;  %v656_v18 = vld [vmem:[%s1197_s3 + $0x28] sm:$0xff]  ;;  %v657_v20 = vld [vmem:[%s1197_s3 + $0x30] sm:$0xff]  ;;  %v658_v21 = vld [vmem:[%s1197_s3 + $0x38] sm:$0xff] }
  0x27   :  { %844 = vmatpush3.bf16.msra.mxu1 %v990_v19  ;;  %v946_v19 = vpack.c.bf16 %v656_v18, %v655_v17  ;;  %v949_v22 = vpack.c.bf16 %v658_v21, %v657_v20  ;;  %v659_v23 = vld [vmem:[%s1197_s3 + $0x40] sm:$0xff] }
  0x28   :  { %845 = vmatprep.subr.bf16.mxu1 %v993_v25  ;;  %v663_v29 = vld [vmem:[%s1197_s3 + $0x60] sm:$0xff] }
  0x29   :  { %824 = vmatpush3.bf16.msra.mxu0 %v992_v24  ;;  %v660_v24 = vld [vmem:[%s1197_s3 + $0x48] sm:$0xff]  ;;  %v812_v60 = vld [vmem:[%s1198_s4] ss:$0 sm:$0xff] }
  0x2a   :  { %825 = vmatprep.subr.bf16.mxu0 %v995_v27  ;;  %v952_v25 = vpack.c.bf16 %v660_v24, %v659_v23  ;;  %v662_v27 = vld [vmem:[%s1197_s3 + $0x58] sm:$0xff] }
  0x2b   :  { %846 = vmatpush3.bf16.msra.mxu1 %v994_v26  ;;  %v661_v26 = vld [vmem:[%s1197_s3 + $0x50] sm:$0xff] }
  0x2c   :  { %847 = vmatprep.subr.bf16.mxu1 %v997_v31  ;;  %v955_v28 = vpack.c.bf16 %v662_v27, %v661_v26 }
  0x2d   :  { %826 = vmatpush3.bf16.msra.mxu0 %v996_v30  ;;  %v664_v30 = vld [vmem:[%s1197_s3 + $0x68] sm:$0xff] }
  0x2e   :  { %827 = vmatprep.subr.bf16.mxu0 %v999_v33  ;;  %v958_v31 = vpack.c.bf16 %v664_v30, %v663_v29  ;;  %v666_v33 = vld [vmem:[%s1197_s3 + $0x78] sm:$0xff] }
  0x2f   :  { %848 = vmatpush3.bf16.msra.mxu1 %v998_v32  ;;  %v665_v32 = vld [vmem:[%s1197_s3 + $0x70] sm:$0xff] }
  0x30   :  { %849 = vmatprep.subr.bf16.mxu1 %v1001_v36  ;;  %v961_v34 = vpack.c.bf16 %v666_v33, %v665_v32  ;;  %v761_v36 = vld [vmem:[%s1196_s2] ss:$0 sm:$0xff] }
  0x31   :  { %828 = vmatpush3.bf16.msra.mxu0 %v1000_v35 }
  0x32   :  { %857 = vmatprep.subr.bf16.mxu0 %v1003_v41 }
  0x33   :  { %850 = vmatpush3.bf16.msra.mxu1 %v1002_v39 }
  0x34   :  { %898 = vmatprep.subr.bf16.mxu1 %v1074_v45  ;;  %523 = vmatmul.mubr.bf16.vlgmr.msra.gmra.mrb[0].mxu0 %v80_v44 }
  0x35   :  { %858 = vmatpush3.bf16.msra.mxu0 %v1005_v48  ;;  %602 = vmatprep.mubr.bf16.mxu0 %v85_v2 }
  0x36   :  { %563 = vmatmul.mubr.bf16.vlgmr.msra.gmra.mrb[0].mxu1 %v82_v49  ;;  %859 = vmatprep.subr.bf16.mxu0 %v1006_v50 }
  0x37   :  { %900 = vmatprep.mubr.msk.bf16.mxu1 %vm1075_vm0, %v1074_v45  ;;  %899 = vmatpush3.bf16.msra.mxu1 %v1020_v58 }
  0x38   :  { %939 = vmatprep.subr.bf16.mxu1 %v1076_v13 }
  0x39   :  { %860 = vmatpush3.bf16.msra.mxu0 %v1007_v52 }
  0x3a   :  { %861 = vmatprep.subr.bf16.mxu0 %v1008_v53 }
  0x3d   :  { %862 = vmatpush3.bf16.msra.mxu0 %v1009_v54 }
  0x3e   :  { %863 = vmatprep.subr.bf16.mxu0 %v1010_v55  ;;  %901 = vmatmul.mubr.msk.bf16.vlgmr.msra.gmra.mrb[4].mxu1 %vm486_vm1, %v86_v3 }
  0x3f   :  { %936 = vmatprep.mubr.msk.f32.mxu1 %vm1075_vm0, %v1074_v45  ;;  %941 = vmatpush3.bf16.msra.mxu1 %v940_v14 }
  0x40   :  { %942 = vmatprep.subr.bf16.mxu1 %v1076_v13 }
  0x41   :  { %864 = vmatpush3.bf16.msra.mxu0 %v1011_v56 }
  0x42   :  { %865 = vmatprep.subr.bf16.mxu0 %v1012_v57 }
  0x43   :  { %944 = vmatpush3.bf16.msra.mxu1 %v943_v16 }
  0x44   :  { %945 = vmatprep.subr.bf16.mxu1 %v1076_v13 }
  0x45   :  { %866 = vmatpush3.bf16.msra.mxu0 %v1013_v62 }
  0x46   :  { %867 = vmatprep.subr.bf16.mxu0 %v1014_v1 }
  0x47   :  { %947 = vmatpush3.bf16.msra.mxu1 %v946_v19 }
  0x48   :  { %948 = vmatprep.subr.bf16.mxu1 %v1076_v13 }
  0x49   :  { %868 = vmatpush3.bf16.msra.mxu0 %v1015_v4 }
  0x4a   :  { %869 = vmatprep.subr.bf16.mxu0 %v1016_v5 }
  0x4b   :  { %950 = vmatpush3.bf16.msra.mxu1 %v949_v22 }
  0x4c   :  { %951 = vmatprep.subr.bf16.mxu1 %v1076_v13 }
  0x4d   :  { %870 = vmatpush3.bf16.msra.mxu0 %v1017_v6 }
  0x4e   :  { %871 = vmatprep.subr.bf16.mxu0 %v1018_v7 }
  0x4f   :  { %953 = vmatpush3.bf16.msra.mxu1 %v952_v25 }
  0x50   :  { %954 = vmatprep.subr.bf16.mxu1 %v1076_v13 }
  0x51   :  { %872 = vmatpush3.bf16.msra.mxu0 %v1019_v8 }
  0x53   :  { %956 = vmatpush3.bf16.msra.mxu1 %v955_v28 }
  0x54   :  { %603 = vmatmul.mubr.bf16.vlgmr.msra.gmra.mrb[4].mxu0 %v84_v9  ;;  %957 = vmatprep.subr.bf16.mxu1 %v1076_v13 }
  0x57   :  { %959 = vmatpush3.bf16.msra.mxu1 %v958_v31 }
  0x58   :  { %960 = vmatprep.subr.bf16.mxu1 %v1076_v13 }
  0x5b   :  { %962 = vmatpush3.bf16.msra.mxu1 %v961_v34 }
 0x107   :  { %v829_v35 = vpop.f32.mrb[0].mxu0 }
 0x108   :  { %v830_v37 = vpop.f32.mrb[1].mxu0 }
 0x109   :  { %v831_v38 = vadd.f32 %v830_v37, %v829_v35  ;;  %v832_v39 = vpop.f32.mrb[2].mxu0  ;;  %v851_v40 = vpop.f32.mrb[0].mxu1 }
 0x10a   :  { %v833_v41 = vpop.f32.mrb[3].mxu0  ;;  %v852_v42 = vpop.f32.mrb[1].mxu1 }
 0x10b   :  { %v525_v43 = vadd.f32 %v831_v38, %v761_v36  ;;  %v853_v44 = vadd.f32 %v852_v42, %v851_v40  ;;  %v854_v45 = vpop.f32.mrb[2].mxu1 }
 0x10c   :  { %v855_v46 = vpop.f32.mrb[3].mxu1 }
 0x10d   :  { %v565_v47 = vadd.f32 %v853_v44, %v525_v43 }
 0x111   :  { %v644_v48 = vpop.f32.mrb[4].mxu1 }
 0x112   :  { %v902_v49 = vpop.f32.mrb[5].mxu1 }
 0x113   :  { %v647_v50 = vpop.f32.mrb[6].mxu1 }
 0x114   :  { %v903_v51 = vpop.f32.mrb[7].mxu1 }
 0x127   :  { %v873_v52 = vpop.f32.mrb[4].mxu0 }
 0x128   :  { %v874_v53 = vpop.f32.mrb[5].mxu0 }
 0x129   :  { %v875_v54 = vadd.f32 %v874_v53, %v873_v52  ;;  %v876_v55 = vpop.f32.mrb[6].mxu0 }
 0x12a   :  { %v877_v56 = vpop.f32.mrb[7].mxu0 }
 0x12b   :  { %v605_v57 = vadd.f32 %v875_v54, %v565_v47 }
 0x12d   :  { %v645_v58 = vadd.f32 %v644_v48, %v605_v57 }
 0x12f   :  { %v650_v59 = vmax.f32 %v645_v58, 0.0 }
 0x131   :  { %937 = vmatmul.mubr.f32.vlgmr.msra.gmra.mrb[8].mxu1 %v650_v59 }
 0x204   :  { %v740_v61 = vpop.f32.mrb[8].mxu1 }
 0x205   :  { %v741_v62 = vadd.f32 %v812_v60, %v740_v61  ;;  %v938_v63 = vpop.f32.mrb[9].mxu1 }
 0x207   :  { %v744_v0 = vmax.f32 %v741_v62, 0.0 }
 0x209   :  { %745 = vst [vmem:[#allocation5] sm:$0x3] %v744_v0 }
 0x20a   :  { %1055 = shalt.err (!%p1052_p12)
}
 0x20b   :  { %s1056_s21 = scalar_lea.hbm %s1199_s5, 32 }
 0x20c   :  { %p1057_p13 = scmp.ne.s32.totalorder %s1199_s5, %s1056_s21  ;;  %p1060_p0 = scmp.lt.u32.totalorder %s1056_s21, %s1199_s5 }
 0x20e   :  { %p1062_p1 = pnand %p1060_p0, %p1057_p13 }
 0x210   :  { %1065 = shalt.err (!%p1062_p1)
}
 0x211   :  { %755 = dma.vmem_to_hbm [thread:$0]  %s753_s17, 32, %s1199_s5, [#allocation4]  }
 0x212   :  { %1068 = dma.done.wait [#allocation4], 32  }
 0x213   :  { %1069 = vsyncadd [#allocation4], 4294967264 }
 0x214   :  { %759 = vsyncpa [#allocation3], 1 }
 0x215   :  { %760 = vsyncpa [#allocation4], 1 }

</bundles_post_ra>
